<compile_context>
chip_gen: v6e
topology: v6e:2x2x1
jax: 0.10.0
libtpu: 0.0.40
codegen_flags: <defaults>
</compile_context>

<pallas_src>
import functools

import jax
import jax.numpy as jnp
import numpy as np
from jax.experimental import pallas as pl
from jax.experimental.pallas import tpu as pltpu


# ---------------------------------------------------------------------------
# tiling helpers
# ---------------------------------------------------------------------------
_ROW_BUDGET_BYTES = 12 * 1024 * 1024   # target VMEM spent on time-tiled rows
_MAX_TT = 1024
_VMEM_LIMIT = 48 * 1024 * 1024         # leaves headroom inside v7x's 64 MiB VMEM


def _round_up(a, b):
    return ((a + b - 1) // b) * b


def _cdiv(a, b):
    return -(-a // b)


def _plan_time_tiles(out_rows, halo, row_bytes):
    """Pick (TT, Hb, n_t): output rows per tile, halo-block rows, number of tiles."""
    hb = _round_up(max(halo, 2), 16)                     # >= halo, sublane aligned
    max_rows = max(hb, _ROW_BUDGET_BYTES // max(row_bytes, 1))
    tt = min(_round_up(out_rows, 16), _MAX_TT, max_rows)
    tt = _round_up(max(tt, hb), hb)                      # multiple of hb (halo-spec trick)
    n_t = _cdiv(out_rows, tt)
    return tt, hb, n_t


def _time_tiled(make_kernel, x, consts, c_out, *, pad, halo, out_rows=None,
                mid_bytes_per_row=0):
    """Run a length-preserving conv-style kernel over (batch, time) tiles.

    The kernel receives
        (x_main (1,TT,C_in), x_halo (1,Hb,C_in), *const_refs,
         out (1,TT,c_out), window scratch (TT+Hb, C_in))
    where rows [t*TT, t*TT+TT+Hb) of the `pad`-left-padded input are the
    concatenation of x_main and x_halo.
    """
    B, T, c_in = x.shape
    if out_rows is None:
        out_rows = T
    isz = jnp.dtype(x.dtype).itemsize
    row_bytes = 3 * c_in * isz + 2 * c_out * isz + mid_bytes_per_row
    tt, hb, n_t = _plan_time_tiles(out_rows, halo, row_bytes)
    r = tt // hb

    # one zero-padded copy in HBM (left pad = conv pad, right pad covers tiles + halo)
    x_pad = jnp.pad(x, ((0, 0), (pad, n_t * tt + hb - pad - T), (0, 0)))

    in_specs = [
        pl.BlockSpec((1, tt, c_in), lambda b, t: (b, t, 0)),
        pl.BlockSpec((1, hb, c_in), lambda b, t, _r=r: (b, (t + 1) * _r, 0)),
    ]
    for c in consts:  # weights / biases: constant blocks, fetched once
        in_specs.append(pl.BlockSpec(c.shape, lambda b, t, _n=c.ndim: (0,) * _n))

    out = pl.pallas_call(
        make_kernel(tt, hb),
        out_shape=jax.ShapeDtypeStruct((B, n_t * tt, c_out), x.dtype),
        grid=(B, n_t),
        in_specs=in_specs,
        out_specs=pl.BlockSpec((1, tt, c_out), lambda b, t: (b, t, 0)),
        scratch_shapes=[pltpu.VMEM((tt + hb, c_in), x.dtype)],
        compiler_params=pltpu.CompilerParams(
            dimension_semantics=("parallel", "parallel"),
            vmem_limit_bytes=_VMEM_LIMIT),
    )(x_pad, x_pad, *consts)
    return out


# ---------------------------------------------------------------------------
# kernels
# ---------------------------------------------------------------------------
def _conv3_kernel(xm_ref, xh_ref, w_ref, b_ref, o_ref, win_ref, *,
                  dil, tt, hb, cdtype):
    """out = conv3(x, dilation=dil) + b  (length preserving, no activation)."""
    win_ref[0:tt, :] = xm_ref[0]
    win_ref[tt:tt + hb, :] = xh_ref[0]
    acc = jnp.zeros((tt, o_ref.shape[2]), jnp.float32)
    for k in range(3):                                   # static tap loop
        xs = win_ref[k * dil:k * dil + tt, :].astype(cdtype)
        acc = acc + jnp.dot(xs, w_ref[k], preferred_element_type=jnp.float32)
    acc = acc + b_ref[...]
    o_ref[0] = acc.astype(o_ref.dtype)


def _resblock_kernel(xm_ref, xh_ref, w1_ref, b1_ref, w2_ref, b2_ref, o_ref,
                     win_ref, *, dil, tt, hb, res_scale, cdtype):
    """Fused Resnet1D block: out = x + res_scale * conv1x1(relu(conv3_dil(relu(x))))."""
    win_ref[0:tt, :] = xm_ref[0]
    win_ref[tt:tt + hb, :] = xh_ref[0]
    n_state = w1_ref.shape[2]
    acc = jnp.zeros((tt, n_state), jnp.float32)
    for k in range(3):
        xs = jnp.maximum(win_ref[k * dil:k * dil + tt, :], 0).astype(cdtype)
        acc = acc + jnp.dot(xs, w1_ref[k], preferred_element_type=jnp.float32)
    h1 = jnp.maximum(acc + b1_ref[...], 0.0).astype(cdtype)
    y = jnp.dot(h1, w2_ref[...], preferred_element_type=jnp.float32) + b2_ref[...]
    res = win_ref[dil:dil + tt, :].astype(jnp.float32)   # un-ReLU'd center rows
    o_ref[0] = (res + res_scale * y).astype(o_ref.dtype)


def _deconv_kernel(xm_ref, xh_ref, w_ref, b_ref, o_ref, win_ref, *,
                   stride, conv_pad, tt, hb, cdtype):
    """Phase-split ConvTranspose1d (kernel = 2*stride): each output phase is a
    2-tap conv over x; phases are concatenated along the lane axis and
    interleaved into time outside the kernel with a free reshape."""
    win_ref[0:tt, :] = xm_ref[0]
    win_ref[tt:tt + hb, :] = xh_ref[0]
    xs = [win_ref[o:o + tt, :].astype(cdtype) for o in range(3)]
    bias = b_ref[...]
    outs = []
    for p in range(stride):
        if p + conv_pad < stride:
            ka, kb, off = stride + p + conv_pad, p + conv_pad, 0
        else:
            ka, kb, off = p + conv_pad, p + conv_pad - stride, 1
        yp = jnp.dot(xs[off], w_ref[ka], preferred_element_type=jnp.float32)
        yp = yp + jnp.dot(xs[off + 1], w_ref[kb], preferred_element_type=jnp.float32)
        outs.append(yp + bias)
    o_ref[0] = jnp.concatenate(outs, axis=1).astype(o_ref.dtype)


# ---------------------------------------------------------------------------
# wrappers
# ---------------------------------------------------------------------------
def conv1d_in_pallas(x, w, b, *, cdtype):
    """nn.Conv1d(C_in, C_out, 3, 1, 1).  x: (B,T,C_in); w: (C_out, C_in, 3)."""
    _, T, _ = x.shape
    c_out = w.shape[0]
    wk = jnp.transpose(w, (2, 1, 0)).astype(cdtype)           # (3, C_in, C_out)
    br = b.reshape(1, c_out).astype(jnp.float32)
    make = lambda tt, hb: functools.partial(_conv3_kernel, dil=1, tt=tt, hb=hb,
                                            cdtype=cdtype)
    out = _time_tiled(make, x, (wk, br), c_out, pad=1, halo=2,
                      mid_bytes_per_row=4 * c_out)
    return out[:, :T, :]


def resblock_pallas(x, w1, b1, w2, b2, *, dilation, res_scale, cdtype):
    """One fused Resnet1D residual block."""
    _, T, c = x.shape
    n_state = w1.shape[0]
    w1k = jnp.transpose(w1, (2, 1, 0)).astype(cdtype)         # (3, c, n_state)
    w2k = jnp.transpose(w2[:, :, 0], (1, 0)).astype(cdtype)   # (n_state, c)
    b1r = b1.reshape(1, n_state).astype(jnp.float32)
    b2r = b2.reshape(1, c).astype(jnp.float32)
    make = lambda tt, hb: functools.partial(
        _resblock_kernel, dil=dilation, tt=tt, hb=hb, res_scale=res_scale,
        cdtype=cdtype)
    out = _time_tiled(make, x, (w1k, b1r, w2k, b2r), c,
                      pad=dilation, halo=2 * dilation,
                      mid_bytes_per_row=4 * (n_state + c))
    return out[:, :T, :]


def conv_transpose1d_pallas(x, w_t, b, *, stride, padding, cdtype):
    """nn.ConvTranspose1d(C_in, C_out, 2*stride, stride, padding).
    x: (B,T,C_in); w_t: (C_in, C_out, 2*stride) torch layout."""
    B, T, _ = x.shape
    _, c_out, K = w_t.shape
    assert K == 2 * stride, "scalar-stride branch uses kernel = 2 * stride"
    wk = jnp.transpose(w_t, (2, 0, 1)).astype(cdtype)         # (K, C_in, C_out)
    br = b.reshape(1, c_out).astype(jnp.float32)
    t_out = (T - 1) * stride - 2 * padding + K
    rows = _cdiv(t_out, stride)                               # per-phase output rows
    make = lambda tt, hb: functools.partial(
        _deconv_kernel, stride=stride, conv_pad=padding, tt=tt, hb=hb,
        cdtype=cdtype)
    out = _time_tiled(make, x, (wk, br), stride * c_out, pad=1, halo=2,
                      out_rows=rows, mid_bytes_per_row=4 * stride * c_out)
    # (B, rows, stride*C_out) -> interleave phases into time (free reshape)
    out = out[:, :rows, :].reshape(B, rows * stride, c_out)
    return out[:, :t_out, :]


# ---------------------------------------------------------------------------
# DecoderConvBock: parameter construction + forward
# ---------------------------------------------------------------------------
def init_decoder_conv_block(key, input_emb_width, output_emb_width, down_t,
                            stride_t, width, depth, m_conv,
                            dilation_growth_rate=1, dilation_cycle=None,
                            res_scale=False, reverse_decoder_dilation=False):
    n_state = int(m_conv * width)
    scale = 0.1

    def nrm(k, shape):
        return (scale * jax.random.normal(k, shape)).astype(jnp.float32)

    keys = iter(jax.random.split(key, 4 + down_t * (4 * depth + 2)))
    params = {
        "conv_in_w": nrm(next(keys), (width, output_emb_width, 3)),
        "conv_in_b": nrm(next(keys), (width,)),
        "blocks": [],
        "stride_t": stride_t,
        "pad_t": stride_t // 2,
        "res_scale": (1.0 / np.sqrt(depth)) if res_scale else 1.0,
    }
    filter_t = stride_t * 2
    for i in range(down_t):
        res_blocks = []
        for d_idx in range(depth):
            eff = d_idx if dilation_cycle is None else d_idx % dilation_cycle
            dilation = dilation_growth_rate ** eff
            res_blocks.append({
                "dilation": dilation,
                "w1": nrm(next(keys), (n_state, width, 3)),
                "b1": nrm(next(keys), (n_state,)),
                "w2": nrm(next(keys), (width, n_state, 1)),
                "b2": nrm(next(keys), (width,)),
            })
        if reverse_decoder_dilation:
            res_blocks = res_blocks[::-1]
        c_out = input_emb_width if i == down_t - 1 else width
        params["blocks"].append({
            "res": res_blocks,
            "wt": nrm(next(keys), (width, c_out, filter_t)),  # ConvTranspose1d layout
            "bt": nrm(next(keys), (c_out,)),
        })
    return params


def decoder_conv_block_forward(params, x_ncl, compute_dtype=jnp.float32):
    """x_ncl: (B, output_emb_width, T)  ->  (B, input_emb_width, T * stride_t**down_t)."""
    h = jnp.transpose(x_ncl, (0, 2, 1))                 # channels-last (B, T, C)
    h = conv1d_in_pallas(h, params["conv_in_w"], params["conv_in_b"],
                         cdtype=compute_dtype)
    rs = params["res_scale"]
    for blk in params["blocks"]:
        for res in blk["res"]:
            h = resblock_pallas(h, res["w1"], res["b1"], res["w2"], res["b2"],
                                dilation=res["dilation"], res_scale=rs,
                                cdtype=compute_dtype)
        h = conv_transpose1d_pallas(h, blk["wt"], blk["bt"],
                                    stride=params["stride_t"],
                                    padding=params["pad_t"],
                                    cdtype=compute_dtype)
    return jnp.transpose(h, (0, 2, 1))                  # back to NCL


# ---------------------------------------------------------------------------
# Pure-JAX reference (XLA convs, NCL layout) for correctness checks
# ---------------------------------------------------------------------------
def _ref_conv1d(x, w, b, padding, dilation):
    y = jax.lax.conv_general_dilated(
        x, w, window_strides=(1,), padding=[(padding, padding)],
        rhs_dilation=(dilation,), dimension_numbers=("NCH", "OIH", "NCH"))
    return y + b[None, :, None]


def _ref_conv_transpose1d(x, w_t, b, stride, padding):
    K = w_t.shape[2]
    w = jnp.transpose(jnp.flip(w_t, -1), (1, 0, 2))
    y = jax.lax.conv_general_dilated(
        x, w, window_strides=(1,), padding=[(K - 1 - padding, K - 1 - padding)],
        lhs_dilation=(stride,), dimension_numbers=("NCH", "OIH", "NCH"))
    return y + b[None, :, None]


def reference_forward(params, x_ncl):
    h = _ref_conv1d(x_ncl, params["conv_in_w"], params["conv_in_b"], 1, 1)
    rs = params["res_scale"]
    for blk in params["blocks"]:
        for res in blk["res"]:
            d = res["dilation"]
            t = _ref_conv1d(jnp.maximum(h, 0.0), res["w1"], res["b1"], d, d)
            t = _ref_conv1d(jnp.maximum(t, 0.0), res["w2"], res["b2"], 0, 1)
            h = h + rs * t
        h = _ref_conv_transpose1d(h, blk["wt"], blk["bt"],
                                  params["stride_t"], params["pad_t"])
    return h


if __name__ == "__main__":
    # Small configuration consistent with the module.
    input_emb_width = 4    # final decoder output channels
    output_emb_width = 8   # latent channels fed into the decoder
    down_t, stride_t = 2, 2
    width, depth, m_conv = 32, 2, 1.0
    dilation_growth_rate = 2

    key = jax.random.PRNGKey(0)
    k_param, k_x = jax.random.split(key)
    params = init_decoder_conv_block(
        k_param, input_emb_width, output_emb_width, down_t, stride_t,
        width, depth, m_conv, dilation_growth_rate=dilation_growth_rate)

    B, T = 2, 8
    x = jax.random.normal(k_x, (B, output_emb_width, T), dtype=jnp.float32)  # NCL

    ref = jax.block_until_ready(reference_forward(params, x))

    # f32 MXU path: tight check against the XLA reference.
    out = jax.block_until_ready(decoder_conv_block_forward(params, x))
    assert out.shape == (B, input_emb_width, T * stride_t ** down_t), out.shape
    np.testing.assert_allclose(np.asarray(out), np.asarray(ref),
                               rtol=1e-4, atol=1e-4)

    # bf16 MXU operands (f32 accumulation): looser check.
    out_bf16 = jax.block_until_ready(
        decoder_conv_block_forward(params, x, compute_dtype=jnp.bfloat16))
    np.testing.assert_allclose(np.asarray(out_bf16), np.asarray(ref),
                               rtol=5e-2, atol=5e-2)

    print("KERNEL_OK")
</pallas_src>

<mosaic_0001>
module attributes {stable_mosaic.version = 11 : i64} {
  func.func @_conv3_kernel(%arg0: i32, %arg1: i32, %arg2: memref<1x16x8xf32, #tpu.memory_space<vmem>>, %arg3: memref<1x16x8xf32, #tpu.memory_space<vmem>>, %arg4: memref<3x8x32xf32, #tpu.memory_space<vmem>>, %arg5: memref<1x32xf32, #tpu.memory_space<vmem>>, %arg6: memref<1x16x32xf32, #tpu.memory_space<vmem>>, %arg7: memref<32x8xf32, #tpu.memory_space<vmem>>) attributes {dimension_semantics = [#tpu.dimension_semantics<parallel>, #tpu.dimension_semantics<parallel>], iteration_bounds = array<i64: 2, 1>, scalar_prefetch = 0 : i64, scratch_operands = 1 : i64, tpu.core_type = #tpu.core_type<tc>, window_params = [{transform_indices = @transform_0, window_bounds = array<i64: 1, 16, 8>}, {transform_indices = @transform_1, window_bounds = array<i64: 1, 16, 8>}, {pipeline_mode = #tpu.pipeline_mode<synchronous>, transform_indices = @transform_2, window_bounds = array<i64: 3, 8, 32>}, {pipeline_mode = #tpu.pipeline_mode<synchronous>, transform_indices = @transform_3, window_bounds = array<i64: 1, 32>}, {transform_indices = @transform_4, window_bounds = array<i64: 1, 16, 32>}]} {
    %c0 = arith.constant 0 : index
    %c0_0 = arith.constant 0 : index
    %c0_1 = arith.constant 0 : index
    %0 = vector.load %arg2[%c0, %c0_0, %c0_1] : memref<1x16x8xf32, #tpu.memory_space<vmem>>, vector<1x16x8xf32>
    %1 = vector.shape_cast %0 : vector<1x16x8xf32> to vector<16x8xf32>
    %c0_2 = arith.constant 0 : index
    %c0_3 = arith.constant 0 : index
    %2 = vector.load %arg7[%c0_2, %c0_3] : memref<32x8xf32, #tpu.memory_space<vmem>>, vector<16x8xf32>
    tpu.vector_store %arg7[%c0_2, %c0_3], %1 {strides = array<i32>} : memref<32x8xf32, #tpu.memory_space<vmem>>, vector<16x8xf32>,
    %c0_4 = arith.constant 0 : index
    %c0_5 = arith.constant 0 : index
    %c0_6 = arith.constant 0 : index
    %3 = vector.load %arg3[%c0_4, %c0_5, %c0_6] : memref<1x16x8xf32, #tpu.memory_space<vmem>>, vector<1x16x8xf32>
    %4 = vector.shape_cast %3 : vector<1x16x8xf32> to vector<16x8xf32>
    %c16 = arith.constant 16 : index
    %c0_7 = arith.constant 0 : index
    %5 = vector.load %arg7[%c16, %c0_7] : memref<32x8xf32, #tpu.memory_space<vmem>>, vector<16x8xf32>
    tpu.vector_store %arg7[%c16, %c0_7], %4 {strides = array<i32>} : memref<32x8xf32, #tpu.memory_space<vmem>>, vector<16x8xf32>,
    %cst = arith.constant 0.000000e+00 : f32
    %6 = vector.broadcast %cst : f32 to vector<16x32xf32>
    %c0_8 = arith.constant 0 : index
    %c0_9 = arith.constant 0 : index
    %7 = vector.load %arg7[%c0_8, %c0_9] : memref<32x8xf32, #tpu.memory_space<vmem>>, vector<16x8xf32>
    %c0_10 = arith.constant 0 : index
    %c0_11 = arith.constant 0 : index
    %c0_12 = arith.constant 0 : index
    %8 = vector.load %arg4[%c0_10, %c0_11, %c0_12] : memref<3x8x32xf32, #tpu.memory_space<vmem>>, vector<1x8x32xf32>
    %9 = vector.shape_cast %8 : vector<1x8x32xf32> to vector<8x32xf32>
    %cst_13 = arith.constant dense<0.000000e+00> : vector<16x32xf32>
    %10 = tpu.matmul %7, %9, %cst_13 {dimension_numbers = #tpu.dot_dimension_numbers<[1], [0], [0], [1], [0, 0, 1, 1], [], []>} : vector<16x8xf32>, vector<8x32xf32>, vector<16x32xf32> -> vector<16x32xf32>
    %11 = arith.addf %6, %10 : vector<16x32xf32>
    %c1 = arith.constant 1 : index
    %c0_14 = arith.constant 0 : index
    %12 = vector.load %arg7[%c1, %c0_14] : memref<32x8xf32, #tpu.memory_space<vmem>>, vector<16x8xf32>
    %c1_15 = arith.constant 1 : index
    %c0_16 = arith.constant 0 : index
    %c0_17 = arith.constant 0 : index
    %13 = vector.load %arg4[%c1_15, %c0_16, %c0_17] : memref<3x8x32xf32, #tpu.memory_space<vmem>>, vector<1x8x32xf32>
    %14 = vector.shape_cast %13 : vector<1x8x32xf32> to vector<8x32xf32>
    %cst_18 = arith.constant dense<0.000000e+00> : vector<16x32xf32>
    %15 = tpu.matmul %12, %14, %cst_18 {dimension_numbers = #tpu.dot_dimension_numbers<[1], [0], [0], [1], [0, 0, 1, 1], [], []>} : vector<16x8xf32>, vector<8x32xf32>, vector<16x32xf32> -> vector<16x32xf32>
    %16 = arith.addf %11, %15 : vector<16x32xf32>
    %c2 = arith.constant 2 : index
    %c0_19 = arith.constant 0 : index
    %17 = vector.load %arg7[%c2, %c0_19] : memref<32x8xf32, #tpu.memory_space<vmem>>, vector<16x8xf32>
    %c2_20 = arith.constant 2 : index
    %c0_21 = arith.constant 0 : index
    %c0_22 = arith.constant 0 : index
    %18 = vector.load %arg4[%c2_20, %c0_21, %c0_22] : memref<3x8x32xf32, #tpu.memory_space<vmem>>, vector<1x8x32xf32>
    %19 = vector.shape_cast %18 : vector<1x8x32xf32> to vector<8x32xf32>
    %cst_23 = arith.constant dense<0.000000e+00> : vector<16x32xf32>
    %20 = tpu.matmul %17, %19, %cst_23 {dimension_numbers = #tpu.dot_dimension_numbers<[1], [0], [0], [1], [0, 0, 1, 1], [], []>} : vector<16x8xf32>, vector<8x32xf32>, vector<16x32xf32> -> vector<16x32xf32>
    %21 = arith.addf %16, %20 : vector<16x32xf32>
    %c0_24 = arith.constant 0 : index
    %c0_25 = arith.constant 0 : index
    %22 = vector.load %arg5[%c0_24, %c0_25] : memref<1x32xf32, #tpu.memory_space<vmem>>, vector<1x32xf32>
    %23 = vector.broadcast %22 : vector<1x32xf32> to vector<16x32xf32>
    %24 = arith.addf %21, %23 : vector<16x32xf32>
    %c0_26 = arith.constant 0 : index
    %c0_27 = arith.constant 0 : index
    %c0_28 = arith.constant 0 : index
    %25 = vector.load %arg6[%c0_26, %c0_27, %c0_28] : memref<1x16x32xf32, #tpu.memory_space<vmem>>, vector<1x16x32xf32>
    %26 = vector.shape_cast %25 : vector<1x16x32xf32> to vector<16x32xf32>
    %27 = vector.shape_cast %24 : vector<16x32xf32> to vector<1x16x32xf32>
    tpu.vector_store %arg6[%c0_26, %c0_27, %c0_28], %27 {strides = array<i32>} : memref<1x16x32xf32, #tpu.memory_space<vmem>>, vector<1x16x32xf32>,
    return
  }
  func.func @transform_0(%arg0: i32, %arg1: i32) -> (i32, i32, i32) {
    %c0_i32 = arith.constant 0 : i32
    %c0_i32_0 = arith.constant 0 : i32
    return %arg0, %arg1, %c0_i32 : i32, i32, i32
  }
  func.func @transform_1(%arg0: i32, %arg1: i32) -> (i32, i32, i32) {
    %c1_i32 = arith.constant 1 : i32
    %0 = arith.addi %arg1, %c1_i32 : i32
    %c1_i32_0 = arith.constant 1 : i32
    %1 = arith.muli %0, %c1_i32_0 : i32
    %c0_i32 = arith.constant 0 : i32
    %c0_i32_1 = arith.constant 0 : i32
    return %arg0, %1, %c0_i32 : i32, i32, i32
  }
  func.func @transform_2(%arg0: i32, %arg1: i32) -> (i32, i32, i32) {
    %c0_i32 = arith.constant 0 : i32
    %c0_i32_0 = arith.constant 0 : i32
    %c0_i32_1 = arith.constant 0 : i32
    %c0_i32_2 = arith.constant 0 : i32
    return %c0_i32, %c0_i32_0, %c0_i32_1 : i32, i32, i32
  }
  func.func @transform_3(%arg0: i32, %arg1: i32) -> (i32, i32) {
    %c0_i32 = arith.constant 0 : i32
    %c0_i32_0 = arith.constant 0 : i32
    %c0_i32_1 = arith.constant 0 : i32
    return %c0_i32, %c0_i32_0 : i32, i32
  }
  func.func @transform_4(%arg0: i32, %arg1: i32) -> (i32, i32, i32) {
    %c0_i32 = arith.constant 0 : i32
    %c0_i32_0 = arith.constant 0 : i32
    return %arg0, %arg1, %c0_i32 : i32, i32, i32
  }
}

</mosaic_0001>

<bundles_post_ra>
// kernel: tpu_custom_call.1
= control target key start
LH: loop header
LB: loop body
LE: loop exit
PB: predicated region body
PF: predicated region fallthrough
CT: control target
= control target key end

     0   :  { %9 = vsyncpa [#allocation4], 0  ;;  %s1014_s0 = inlined_call_operand.vmem [shape: f32[2,32,8], index: 0, kind: input, shape index: {}]   ;;  %s1015_s1 = inlined_call_operand.vmem [shape: f32[2,32,8], index: 1, kind: input, shape index: {}]   ;;  %s1016_s2 = inlined_call_operand.vmem [shape: f32[3,8,32], index: 2, kind: input, shape index: {}]   ;;  %s1017_s3 = inlined_call_operand.vmem [shape: f32[1,32], index: 3, kind: input, shape index: {}]   ;;  %s1018_s4 = inlined_call_operand.hbm [shape: f32[2,16,32], index: 4, kind: output, shape index: {}]  }
   0x1   :  { %11 = vsyncpa [#allocation4 + $0x1], 0  ;;  %s876_s15 = smov 0   ;;  %s878_s16 = smov 0  }
   0x2   :  { %s880_s17 = smov 0   ;;  %s882_s18 = smov 0  }
   0x3   :  { %s884_s19 = smov 0   ;;  %s886_s20 = smov 0  }
   0x4 LB: > { %s660_s21 = sadd.s32 4294967295, %s846_s20   ;;  %s661_s22 = sadd.s32 4294967294, %s846_s20   ;;  %s846_s20 = sphi %s886_s20, %s17_s20   ;;  %s842_s19 = sphi %s884_s19, %s1025_s19   ;;  %s838_s18 = sphi %s882_s18, %s1024_s18   ;;  %s834_s17 = sphi %s880_s17, %s1023_s17   ;;  %s830_s16 = sphi %s878_s16, %s1022_s16   ;;  %s826_s15 = sphi %s876_s15, %s1021_s15  }
   0x5   : > { %s29_s23 = sadd.s32 1, %s842_s19  ;;  %s138_s24 = sadd.s32 1, %s834_s17 }
   0x6   : > { %p31_p0 = scmp.ge.s32.totalorder %s29_s23, 2  ;;  %p148_p1 = scmp.ne.s32.totalorder %s834_s17, %s830_s16 }
   0x7   : > { %p149_p2 = scmp.eq.s32.totalorder %s660_s21, 1  ;;  %p154_p3 = scmp.ne.s32.totalorder %s830_s16, %s826_s15 }
   0x8   : > { %s1027_s23 = smov (%p31_p0, %s29_s23), 0  ;;  %p155_p5 = scmp.eq.s32.totalorder %s661_s22, 1 }
   0x9   : > { %p916_p4 = por %p149_p2, %p148_p1  ;;  %s133_s26 = ssub.s32 %s842_s19, %s1027_s23 }
   0xa   : > { %p664_p6 = scmp.ge.s32.totalorder %s846_s20, 1  ;;  %p136_p7 = scmp.eq.s32.totalorder %s133_s26, 0 }
   0xb   : > { %p923_p8 = por %p155_p5, %p154_p3  ;;  %p207_p9 = scmp.lt.s32.totalorder %s846_s20, 3 }
   0xc   : > { %s929_s28 = scalar_select %p136_p7, %s834_s17, %s138_s24  }
   0xd   : > { %p208_p10 = pnand %p664_p6, %p207_p9 }
   0xe   : > { %p248_p11 = scmp.lt.s32.totalorder (!%p208_p10), %s838_s18, 1  ;;  %s244_s26 = sand.u32 (!%p208_p10), 1, %s830_s16  }
   0xf   : > { %211 = sbr.rel (%p208_p10) target bundleno = 252 (0xfc), region = 36  ;;  %s665_s29 = sshll.u32 (!%p208_p10), %s244_s26, 4 }
  0x10   : > { %s246_s6 = scalar_lea.vmem (!%p208_p10), [#allocation3], %s665_s29  ;;  %s687_s8 = sshll.u32 (!%p208_p10), %s838_s18, 8 }
  0x11   : > { %s563_s7 = sshll.u32 (!%p208_p10), %s246_s6, 4  ;;  %s965_s11 = scalar_lea.hbm (!%p208_p10), %s1018_s4, %s687_s8  ;;  %s967_s7 = int_to_ptr.vmem [resolvable:$true] %s563_s7 }
  0x12   : > { %s969_s12 = scalar_lea.sflag (!%p208_p10), [#allocation4], %s244_s26 }
  0x14   : > { %v670_v0 = vld [vmem:[%s1016_s2 + $0x8] sm:$0xff]  ;;  %v281_v1 = vld [vmem:[%s1016_s2] sm:$0xff]  ;;  %v675_v2 = vld [vmem:[%s1016_s2 + $0x10] sm:$0xff]  ;;  %s249_s9 = scalar_select %p248_p11, %s838_s18, 1  ;;  %vm272_vm0 = vcmask 64512   ;;  %vm544_vm1 = vcmask 261120  }
  0x15   : > { %698 = vmatprep.subr.mxu0 %v670_v0  ;;  %703 = vmatprep.subr.mxu1 %v281_v1  ;;  %v678_v18 = vld [vmem:[%s1017_s3] ss:$0 sm:$0xff]  ;;  %s770_s18 = scalar_lea.vmem %s967_s7, 256 }
  0x16   : > { %699 = vmatpush3.msra.mxu0 %v670_v0  ;;  %704 = vmatpush3.msra.mxu1 %v281_v1  ;;  %s684_s10 = sshll.u32 %s249_s9, 5  ;;  %p771_p12 = scmp.ne.s32.totalorder %s967_s7, %s770_s18 }
  0x17   : > { %708 = vmatprep.subr.mxu0 %v675_v2  ;;  %s255_s13 = scalar_lea.vmem %s1014_s0, %s684_s10  ;;  %s686_s14 = sadd.s32 16, %s684_s10 }
  0x18   : > { %s266_s24 = scalar_lea.vmem %s1015_s1, %s686_s14  ;;  %v270_v3 = vld [vmem:[%s255_s13] sm:$0xff]  ;;  %v271_v4 = vld [vmem:[%s255_s13 + $0x8] sm:$0xff]  ;;  %p772_p13 = pnand %p771_p12, %p916_p4 }
  0x19   : > { %273 = vst.msk [vmem:[#allocation2] sm:$0xff] %vm272_vm0, %v270_v3  ;;  %274 = vst.msk [vmem:[#allocation2 + $0x8] sm:$0xff] %vm272_vm0, %v271_v4  ;;  %v275_v5 = vld [vmem:[%s266_s24] sm:$0xff]  ;;  %s848_s13 = smov [#allocation3]  }
  0x1a   : > { %277 = vst.msk [vmem:[#allocation2 + $0x10] sm:$0xff] %vm272_vm0, %v275_v5  ;;  %p773_p0 = pneg %p772_p13  ;;  %s774_s14 = sshll.u32 %s848_s13, 4  ;;  %s775_s14 = int_to_ptr.vmem [resolvable:$false] %s774_s14 }
  0x1b   : > { %s776_s21 = scalar_lea.vmem %s775_s14, 512  ;;  %p777_p1 = scmp.lt.s32.totalorder %s967_s7, %s775_s14 }
  0x1c   : > { %p778_p2 = scmp.lt.s32.totalorder %s776_s21, %s770_s18 }
  0x1e   : > { %p779_p3 = por %p778_p2, %p777_p1 }
  0x20   : > { %v282_v6 = vld [vmem:[#allocation2 + $0x1] sm:$0xff]  ;;  %p780_p5 = pnand %p779_p3, %p773_p0 }
  0x21   : > { %v279_v7 = vld [vmem:[#allocation2] sm:$0xff]  ;;  %v280_v8 = vld [vmem:[#allocation2 + $0x8] sm:$0xff]  ;;  %700 = vmatprep.mubr.msk.f32.mxu0 %vm272_vm0, %v282_v6 }
  0x22   : > { %705 = vmatprep.mubr.msk.f32.mxu1 %vm272_vm0, %v279_v7  ;;  %v283_v9 = vld [vmem:[#allocation2 + $0x9] sm:$0xff] }
  0x23   : > { %v448_v10 = vld [vmem:[#allocation2 + $0x2] sm:$0xff]  ;;  %701 = vmatmul.mubr.msk.f32.vlgmr.msra.gmra.mxu0 %vm272_vm0, %v283_v9  ;;  %706 = vmatmul.mubr.msk.f32.vlgmr.msra.gmra.mxu1 %vm272_vm0, %v280_v8  ;;  %v449_v11 = vld [vmem:[#allocation2 + $0xa] sm:$0xff] }
  0x24   : > { %709 = vmatpush3.msra.mxu0 %v675_v2  ;;  %710 = vmatprep.mubr.msk.f32.mxu0 %vm272_vm0, %v448_v10 }
  0x27   : > { %711 = vmatmul.mubr.msk.f32.vlgmr.msra.gmra.mxu0 %vm272_vm0, %v449_v11 }
  0xe3   : > { %v702_v12 = vpop.f32.mrf.mxu0  ;;  %v707_v13 = vpop.f32.mrf.mxu1 }
  0xe4   : > { %v445_v16 = vadd.f32 %v707_v13, %v702_v12 }
  0xe5   : > { %v358_v14 = vpop.f32.mrf.mxu0  ;;  %v439_v15 = vpop.f32.mrf.mxu1 }
  0xe6   : > { %v440_v19 = vadd.f32 %v439_v15, %v358_v14 }
  0xe7   : > { %v712_v17 = vpop.f32.mrf.mxu0 }
  0xe8   : > { %v534_v20 = vadd.f32 %v712_v17, %v445_v16 }
  0xe9   : > { %v524_v21 = vpop.f32.mrf.mxu0 }
  0xea   : > { %v543_v22 = vadd.f32 %v678_v18, %v534_v20  ;;  %v533_v23 = vadd.f32 %v524_v21, %v440_v19 }
  0xec   : > { %546 = vst.msk [vmem:[%s246_s6 + $0x8] sm:$0xff] %vm544_vm1, %v543_v22  ;;  %v542_v24 = vadd.f32 %v678_v18, %v533_v23 }
  0xee   : > { %545 = vst.msk [vmem:[%s246_s6] sm:$0xff] %vm544_vm1, %v542_v24 }
  0xef   : > { %783 = shalt.err (!%p780_p5)
}
  0xf0   : > { %s784_s22 = scalar_lea.hbm %s965_s11, 256  ;;  %s788_s29 = scalar_lea.hbm %s1018_s4, 512 }
  0xf1   : > { %p785_p6 = scmp.ne.s32.totalorder %s965_s11, %s784_s22  ;;  %p789_p10 = scmp.lt.s32.totalorder %s965_s11, %s1018_s4 }
  0xf2   : > { %p790_p11 = scmp.lt.s32.totalorder %s788_s29, %s784_s22 }
  0xf3   : > { %p786_p7 = pnand %p785_p6, %p916_p4 }
  0xf4   : > { %p791_p12 = por %p790_p11, %p789_p10 }
  0xf5   : > { %p787_p9 = pneg %p786_p7 }
  0xf7   : > { %p792_p13 = pnand %p791_p12, %p787_p9 }
  0xf9   : > { %795 = shalt.err (!%p792_p13)
}
  0xfa   : > { %s849_s6 = smov 128   ;;  %s850_s8 = smov 8  }
  0xfb   : > { %713 = dma.vmem_to_hbm [thread:$0]  (%p916_p4), %s967_s7, 256, %s965_s11, %s969_s12, %s849_s6, %s849_s6, %s850_s8  }
  0xfc PF: > { %p719_p0 = scmp.ge.s32.totalorder %s846_s20, 2  ;;  %s578_s9 = sand.u32 1, %s826_s15  }
  0xfd   : > { %s579_s10 = scalar_lea.sflag [#allocation4], %s578_s9 }
  0xfe   : > { %p716_p1 = pnand %p719_p0, %p923_p8 }
 0x100   : > { %p717_p2 = pneg %p716_p1 }
 0x102   : > { %821 = dma.done.wait (%p717_p2), %s579_s10, 256  }
 0x103   : > { %823 = vsyncadd (%p717_p2), %s579_s10, 4294967040  ;;  %s17_s20 = sadd.s32 1, %s846_s20   ;;  %s1021_s15 = smov %s830_s16 }
 0x104   : > { %p14_p3 = scmp.ge.s32.totalorder %s17_s20, 4   ;;  %s1022_s16 = smov %s834_s17 }
 0x105   : > { %s1023_s17 = smov %s929_s28  ;;  %s1024_s18 = smov %s842_s19 }
 0x106   : > { %s1025_s19 = smov %s1027_s23  ;;  %16 = sbr.rel (!%p14_p3) target bundleno = 4 (0x4), region = 76 }
 0x10b   :  { %584 = vsyncpa [#allocation4], 1 }
 0x10c   :  { %586 = vsyncpa [#allocation4 + $0x1], 1 }

</bundles_post_ra>
